<compile_context>
chip_gen: v5e
topology: v5e:2x2
jax: 0.10.0
libtpu: 0.0.40
codegen_flags: <defaults>
</compile_context>

<pallas_src>
import functools
import math

import jax
import jax.numpy as jnp
from jax.experimental import pallas as pl
from jax.experimental.pallas import tpu as pltpu

_LANE = 128
_SUBLANE = 8


def _round_up(x, m):
    return ((x + m - 1) // m) * m


def _cdiv(a, b):
    return -(-a // b)


def _elu(y):
    # ELU, alpha=1.0 (torch.nn.ELU() default). exp(y)-1 instead of expm1 keeps
    # the lowering on the guaranteed EUP exp path; the accuracy delta near 0 is
    # far below the tolerances used here.
    return jnp.where(y > 0, y, jnp.exp(y) - 1.0)


def _epilogue_dtype():
    """bf16 ELU epilogue on chips with a bf16 VPU/EUP path (v6e, v7x); fp32 otherwise."""
    try:
        kind = jax.devices()[0].device_kind.lower()
    except Exception:
        return jnp.float32
    if ("v6" in kind) or ("v7" in kind) or ("7x" in kind):
        return jnp.bfloat16
    return jnp.float32


def dense_odenet_kernel(n_layers, ep_dtype, x_ref, *refs):
    """refs = [w_0, beff_0, ..., w_{L-1}, beff_{L-1}, out_ref].

    w_0    : f32  [d_in, h_pad]      (natural input width, 128-padded output width)
    w_i>0  : bf16 [h_pad, h_pad]     (zero-padded, resident MXU operand)
    beff_i : f32  [1, h_pad]         (= b_i + t * w_t_i, folded in the wrapper)
    """
    out_ref = refs[-1]
    params = refs[:-1]
    d_in = x_ref.shape[1]

    # ---- layer 0: lift the natural-width input to the padded hidden width ----
    x = x_ref[...]                       # (tb, d_in) f32 — no feature padding in HBM
    w0 = params[0][...]                  # (d_in, h_pad) f32, resident
    be0 = params[1][...]                 # (1, h_pad) f32
    if d_in <= 32:
        # Tiny data dim (the CNF regime): a handful of broadcast FMAs on the VPU
        # beat an underfilled MXU pass and need no zero-extension of x.
        y = jnp.broadcast_to(be0, (x.shape[0], w0.shape[1]))
        for j in range(d_in):
            y = y + x[:, j:j + 1] * w0[j:j + 1, :]
    else:
        y = jnp.dot(x, w0, preferred_element_type=jnp.float32) + be0

    # ---- hidden / output layers on the MXU (128-padded bf16 weights) ---------
    for i in range(1, n_layers):
        # ELU epilogue of the previous layer; bf16 compare/select/exp on v6e/v7x.
        h = _elu(y.astype(ep_dtype)).astype(jnp.bfloat16)
        w = params[2 * i][...]           # bf16 (h_pad, h_pad), resident in VMEM
        be = params[2 * i + 1][...]      # f32  (1, h_pad)
        y = jnp.dot(h, w, preferred_element_type=jnp.float32) + be

    # Last layer has no activation; store only the d_out valid columns.
    out_ref[...] = y[:, :out_ref.shape[1]].astype(out_ref.dtype)


def init_params(key, input_size, hidden_dims=(64, 64, 64)):
    """torch.nn.Linear-style init; last layer weight & bias zeroed like the module.

    Returns a list of (wx [in, out], wt [1, out], b [1, out]) fp32 tuples, where
    wt is the column of the Linear weight that multiplies the appended t.
    """
    params = []
    in_size = input_size
    dims = list(hidden_dims) + [input_size]
    for li, dim in enumerate(dims):
        fan_in = in_size + 1
        bound = 1.0 / math.sqrt(fan_in)
        key, k1, k2 = jax.random.split(key, 3)
        if li == len(dims) - 1:
            w = jnp.zeros((fan_in, dim), jnp.float32)
            b = jnp.zeros((1, dim), jnp.float32)
        else:
            w = jax.random.uniform(k1, (fan_in, dim), jnp.float32, -bound, bound)
            b = jax.random.uniform(k2, (1, dim), jnp.float32, -bound, bound)
        params.append((w[:in_size, :], w[in_size:in_size + 1, :], b))
        in_size = dim
    return params


def prepare_params(params):
    """One-time prep, hoisted out of the per-step (per-ODE-evaluation) path.

    * layer 0 weight stays f32 at its natural (d_in, h_pad) shape (VPU lift);
    * deeper weights are zero-padded to 128-multiples and cast to bf16 (MXU);
    * w_t and b are pre-padded so the per-call fold b + t*w_t needs no pad op.
    """
    layers = []
    for li, (wx, wt, b) in enumerate(params):
        din, dout = wx.shape
        out_pad = _round_up(dout, _LANE)
        if li == 0:
            w_p = jnp.zeros((din, out_pad), jnp.float32).at[:, :dout].set(wx)
        else:
            in_pad = _round_up(din, _LANE)
            w_p = (jnp.zeros((in_pad, out_pad), jnp.float32)
                   .at[:din, :dout].set(wx).astype(jnp.bfloat16))
        wt_p = jnp.zeros((1, out_pad), jnp.float32).at[:, :dout].set(wt)
        b_p = jnp.zeros((1, out_pad), jnp.float32).at[:, :dout].set(b)
        layers.append((w_p, wt_p, b_p))
    return {"layers": layers, "d_out": params[-1][0].shape[1]}


def dense_odenet_forward(t, x, prepared, *, batch_tile=2048):
    # Mirror the torch "while len(x.shape) > 2: sum over axis 2 (size 1)" squeeze.
    while x.ndim > 2:
        assert x.shape[2] == 1
        x = jnp.sum(x, axis=2)
    x = x.astype(jnp.float32)

    B, d_in = x.shape
    layers = prepared["layers"]
    d_out = prepared["d_out"]
    n_layers = len(layers)
    t = jnp.asarray(t, jnp.float32)
    ep_dtype = _epilogue_dtype()

    # ---- batch tiling: >=2 grid steps (both v7x TCs busy) and minimal padding.
    n_steps = max(2, _cdiv(B, batch_tile))
    tb = min(batch_tile, _round_up(_cdiv(B, n_steps), _SUBLANE))
    n_steps = _cdiv(B, tb)
    b_pad = n_steps * tb
    if b_pad != B:
        x = jnp.pad(x, ((0, b_pad - B), (0, 0)))

    flat = []
    in_specs = [pl.BlockSpec((tb, d_in), lambda i: (i, 0))]
    for (w_p, wt_p, b_p) in layers:
        beff = b_p + t * wt_p            # (1, h_pad) f32 — only per-call param work
        flat += [w_p, beff]
        # Constant block index across the batch grid -> weights stay resident.
        in_specs.append(pl.BlockSpec(w_p.shape, lambda i: (0, 0)))
        in_specs.append(pl.BlockSpec(beff.shape, lambda i: (0, 0)))

    flops = 2 * b_pad * sum(w.shape[0] * w.shape[1] for (w, _, _) in layers)
    transcendentals = b_pad * sum(w.shape[1] for (w, _, _) in layers[:-1])
    bytes_accessed = (x.size * 4 + b_pad * d_out * 4
                      + sum(w.size * w.dtype.itemsize + 2 * b.size * 4
                            for (w, _, b) in layers))

    kernel = functools.partial(dense_odenet_kernel, n_layers, ep_dtype)
    out = pl.pallas_call(
        kernel,
        out_shape=jax.ShapeDtypeStruct((b_pad, d_out), jnp.float32),
        grid=(n_steps,),
        in_specs=in_specs,
        out_specs=pl.BlockSpec((tb, d_out), lambda i: (i, 0)),
        compiler_params=pltpu.CompilerParams(
            dimension_semantics=("parallel",)),
        cost_estimate=pl.CostEstimate(
            flops=flops,
            transcendentals=transcendentals,
            bytes_accessed=bytes_accessed),
    )(x, *flat)

    return out[:B] if b_pad != B else out


def dense_odenet_reference(t, x, params):
    """Pure-JAX fp32 reference replicating the PyTorch forward."""
    while x.ndim > 2:
        assert x.shape[2] == 1
        x = jnp.sum(x, axis=2)
    h = x.astype(jnp.float32)
    n = len(params)
    for i, (wx, wt, b) in enumerate(params):
        y = h @ wx + t * wt + b
        h = _elu(y) if i < n - 1 else y
    return h


if __name__ == "__main__":
    key = jax.random.PRNGKey(0)
    k_x, k_p, k_w = jax.random.split(key, 3)

    input_size = 4
    batch = 2
    t = 0.5

    # Extra trailing singleton dims to exercise the squeeze path.
    x = jax.random.normal(k_x, (batch, input_size, 1, 1), dtype=jnp.float32)
    params = init_params(k_p, input_size, hidden_dims=(64, 64, 64))
    prepared = prepare_params(params)           # hoisted, reused across calls

    out = jax.block_until_ready(dense_odenet_forward(t, x, prepared))
    ref = dense_odenet_reference(t, x, params)
    assert out.shape == (batch, input_size)
    assert jnp.allclose(out, ref, atol=1e-4, rtol=1e-4)
    # Final layer is zero-initialized (matches torch.nn.init.zeros_), so output is 0.
    assert jnp.allclose(out, 0.0)

    # Extra check with a non-zero last layer to exercise the real math path
    # (bf16 MXU operands / possibly bf16 ELU epilogue -> loose tolerance vs fp32).
    fan_in = params[-1][0].shape[0] + 1
    bound = 1.0 / math.sqrt(fan_in)
    k1, k2 = jax.random.split(k_w)
    wx_l = jax.random.uniform(k1, params[-1][0].shape, jnp.float32, -bound, bound)
    wt_l = jax.random.uniform(k2, params[-1][1].shape, jnp.float32, -bound, bound)
    b_l = jnp.zeros_like(params[-1][2])
    params2 = params[:-1] + [(wx_l, wt_l, b_l)]
    prepared2 = prepare_params(params2)
    out2 = jax.block_until_ready(dense_odenet_forward(t, x, prepared2))
    ref2 = dense_odenet_reference(t, x, params2)
    assert jnp.allclose(out2, ref2, atol=3e-2, rtol=3e-2)

    print("KERNEL_OK")
</pallas_src>

<mosaic_0001>
module attributes {stable_mosaic.version = 11 : i64} {
  func.func @dense_odenet_kernel(%arg0: i32, %arg1: memref<8x4xf32, #tpu.memory_space<vmem>>, %arg2: memref<4x128xf32, #tpu.memory_space<vmem>>, %arg3: memref<1x128xf32, #tpu.memory_space<vmem>>, %arg4: memref<128x128xbf16, #tpu.memory_space<vmem>>, %arg5: memref<1x128xf32, #tpu.memory_space<vmem>>, %arg6: memref<128x128xbf16, #tpu.memory_space<vmem>>, %arg7: memref<1x128xf32, #tpu.memory_space<vmem>>, %arg8: memref<128x128xbf16, #tpu.memory_space<vmem>>, %arg9: memref<1x128xf32, #tpu.memory_space<vmem>>, %arg10: memref<8x4xf32, #tpu.memory_space<vmem>>) attributes {dimension_semantics = [#tpu.dimension_semantics<parallel>], iteration_bounds = array<i64: 1>, scalar_prefetch = 0 : i64, scratch_operands = 0 : i64, tpu.core_type = #tpu.core_type<tc>, window_params = [{transform_indices = @transform_0, window_bounds = array<i64: 8, 4>}, {pipeline_mode = #tpu.pipeline_mode<synchronous>, transform_indices = @transform_1, window_bounds = array<i64: 4, 128>}, {pipeline_mode = #tpu.pipeline_mode<synchronous>, transform_indices = @transform_2, window_bounds = array<i64: 1, 128>}, {pipeline_mode = #tpu.pipeline_mode<synchronous>, transform_indices = @transform_3, window_bounds = array<i64: 128, 128>}, {pipeline_mode = #tpu.pipeline_mode<synchronous>, transform_indices = @transform_4, window_bounds = array<i64: 1, 128>}, {pipeline_mode = #tpu.pipeline_mode<synchronous>, transform_indices = @transform_5, window_bounds = array<i64: 128, 128>}, {pipeline_mode = #tpu.pipeline_mode<synchronous>, transform_indices = @transform_6, window_bounds = array<i64: 1, 128>}, {pipeline_mode = #tpu.pipeline_mode<synchronous>, transform_indices = @transform_7, window_bounds = array<i64: 128, 128>}, {pipeline_mode = #tpu.pipeline_mode<synchronous>, transform_indices = @transform_8, window_bounds = array<i64: 1, 128>}, {transform_indices = @transform_9, window_bounds = array<i64: 8, 4>}]} {
    %c0 = arith.constant 0 : index
    %c0_0 = arith.constant 0 : index
    %0 = vector.load %arg1[%c0, %c0_0] : memref<8x4xf32, #tpu.memory_space<vmem>>, vector<8x4xf32>
    %c0_1 = arith.constant 0 : index
    %c0_2 = arith.constant 0 : index
    %1 = vector.load %arg2[%c0_1, %c0_2] : memref<4x128xf32, #tpu.memory_space<vmem>>, vector<4x128xf32>
    %c0_3 = arith.constant 0 : index
    %c0_4 = arith.constant 0 : index
    %2 = vector.load %arg3[%c0_3, %c0_4] : memref<1x128xf32, #tpu.memory_space<vmem>>, vector<1x128xf32>
    %3 = vector.shape_cast %2 : vector<1x128xf32> to vector<1x128xf32>
    %4 = vector.broadcast %3 : vector<1x128xf32> to vector<8x128xf32>
    %5 = vector.extract_strided_slice %0 {offsets = [0, 0], sizes = [8, 1], strides = [1, 1]} : vector<8x4xf32> to vector<8x1xf32>
    %6 = vector.extract_strided_slice %1 {offsets = [0, 0], sizes = [1, 128], strides = [1, 1]} : vector<4x128xf32> to vector<1x128xf32>
    %7 = vector.broadcast %5 : vector<8x1xf32> to vector<8x128xf32>
    %8 = vector.broadcast %6 : vector<1x128xf32> to vector<8x128xf32>
    %9 = arith.mulf %7, %8 : vector<8x128xf32>
    %10 = arith.addf %4, %9 : vector<8x128xf32>
    %11 = vector.extract_strided_slice %0 {offsets = [0, 1], sizes = [8, 1], strides = [1, 1]} : vector<8x4xf32> to vector<8x1xf32>
    %12 = vector.extract_strided_slice %1 {offsets = [1, 0], sizes = [1, 128], strides = [1, 1]} : vector<4x128xf32> to vector<1x128xf32>
    %13 = vector.broadcast %11 : vector<8x1xf32> to vector<8x128xf32>
    %14 = vector.broadcast %12 : vector<1x128xf32> to vector<8x128xf32>
    %15 = arith.mulf %13, %14 : vector<8x128xf32>
    %16 = arith.addf %10, %15 : vector<8x128xf32>
    %17 = vector.extract_strided_slice %0 {offsets = [0, 2], sizes = [8, 1], strides = [1, 1]} : vector<8x4xf32> to vector<8x1xf32>
    %18 = vector.extract_strided_slice %1 {offsets = [2, 0], sizes = [1, 128], strides = [1, 1]} : vector<4x128xf32> to vector<1x128xf32>
    %19 = vector.broadcast %17 : vector<8x1xf32> to vector<8x128xf32>
    %20 = vector.broadcast %18 : vector<1x128xf32> to vector<8x128xf32>
    %21 = arith.mulf %19, %20 : vector<8x128xf32>
    %22 = arith.addf %16, %21 : vector<8x128xf32>
    %23 = vector.extract_strided_slice %0 {offsets = [0, 3], sizes = [8, 1], strides = [1, 1]} : vector<8x4xf32> to vector<8x1xf32>
    %24 = vector.extract_strided_slice %1 {offsets = [3, 0], sizes = [1, 128], strides = [1, 1]} : vector<4x128xf32> to vector<1x128xf32>
    %25 = vector.broadcast %23 : vector<8x1xf32> to vector<8x128xf32>
    %26 = vector.broadcast %24 : vector<1x128xf32> to vector<8x128xf32>
    %27 = arith.mulf %25, %26 : vector<8x128xf32>
    %28 = arith.addf %22, %27 : vector<8x128xf32>
    %cst = arith.constant 0.000000e+00 : f32
    %29 = vector.broadcast %cst : f32 to vector<8x128xf32>
    %30 = arith.cmpf ogt, %28, %29 : vector<8x128xf32>
    %31 = math.exp %28 : vector<8x128xf32>
    %cst_5 = arith.constant 1.000000e+00 : f32
    %32 = vector.broadcast %cst_5 : f32 to vector<8x128xf32>
    %33 = arith.subf %31, %32 : vector<8x128xf32>
    %34 = arith.select %30, %28, %33 : vector<8x128xi1>, vector<8x128xf32>
    %35 = arith.truncf %34 : vector<8x128xf32> to vector<8x128xbf16>
    %c0_6 = arith.constant 0 : index
    %c0_7 = arith.constant 0 : index
    %36 = vector.load %arg4[%c0_6, %c0_7] : memref<128x128xbf16, #tpu.memory_space<vmem>>, vector<128x128xbf16>
    %c0_8 = arith.constant 0 : index
    %c0_9 = arith.constant 0 : index
    %37 = vector.load %arg5[%c0_8, %c0_9] : memref<1x128xf32, #tpu.memory_space<vmem>>, vector<1x128xf32>
    %cst_10 = arith.constant dense<0.000000e+00> : vector<8x128xf32>
    %38 = tpu.matmul %35, %36, %cst_10 {dimension_numbers = #tpu.dot_dimension_numbers<[1], [0], [0], [1], [0, 0, 1, 1], [], []>} : vector<8x128xbf16>, vector<128x128xbf16>, vector<8x128xf32> -> vector<8x128xf32>
    %39 = vector.broadcast %37 : vector<1x128xf32> to vector<8x128xf32>
    %40 = arith.addf %38, %39 : vector<8x128xf32>
    %cst_11 = arith.constant 0.000000e+00 : f32
    %41 = vector.broadcast %cst_11 : f32 to vector<8x128xf32>
    %42 = arith.cmpf ogt, %40, %41 : vector<8x128xf32>
    %43 = math.exp %40 : vector<8x128xf32>
    %cst_12 = arith.constant 1.000000e+00 : f32
    %44 = vector.broadcast %cst_12 : f32 to vector<8x128xf32>
    %45 = arith.subf %43, %44 : vector<8x128xf32>
    %46 = arith.select %42, %40, %45 : vector<8x128xi1>, vector<8x128xf32>
    %47 = arith.truncf %46 : vector<8x128xf32> to vector<8x128xbf16>
    %c0_13 = arith.constant 0 : index
    %c0_14 = arith.constant 0 : index
    %48 = vector.load %arg6[%c0_13, %c0_14] : memref<128x128xbf16, #tpu.memory_space<vmem>>, vector<128x128xbf16>
    %c0_15 = arith.constant 0 : index
    %c0_16 = arith.constant 0 : index
    %49 = vector.load %arg7[%c0_15, %c0_16] : memref<1x128xf32, #tpu.memory_space<vmem>>, vector<1x128xf32>
    %cst_17 = arith.constant dense<0.000000e+00> : vector<8x128xf32>
    %50 = tpu.matmul %47, %48, %cst_17 {dimension_numbers = #tpu.dot_dimension_numbers<[1], [0], [0], [1], [0, 0, 1, 1], [], []>} : vector<8x128xbf16>, vector<128x128xbf16>, vector<8x128xf32> -> vector<8x128xf32>
    %51 = vector.broadcast %49 : vector<1x128xf32> to vector<8x128xf32>
    %52 = arith.addf %50, %51 : vector<8x128xf32>
    %cst_18 = arith.constant 0.000000e+00 : f32
    %53 = vector.broadcast %cst_18 : f32 to vector<8x128xf32>
    %54 = arith.cmpf ogt, %52, %53 : vector<8x128xf32>
    %55 = math.exp %52 : vector<8x128xf32>
    %cst_19 = arith.constant 1.000000e+00 : f32
    %56 = vector.broadcast %cst_19 : f32 to vector<8x128xf32>
    %57 = arith.subf %55, %56 : vector<8x128xf32>
    %58 = arith.select %54, %52, %57 : vector<8x128xi1>, vector<8x128xf32>
    %59 = arith.truncf %58 : vector<8x128xf32> to vector<8x128xbf16>
    %c0_20 = arith.constant 0 : index
    %c0_21 = arith.constant 0 : index
    %60 = vector.load %arg8[%c0_20, %c0_21] : memref<128x128xbf16, #tpu.memory_space<vmem>>, vector<128x128xbf16>
    %c0_22 = arith.constant 0 : index
    %c0_23 = arith.constant 0 : index
    %61 = vector.load %arg9[%c0_22, %c0_23] : memref<1x128xf32, #tpu.memory_space<vmem>>, vector<1x128xf32>
    %cst_24 = arith.constant dense<0.000000e+00> : vector<8x128xf32>
    %62 = tpu.matmul %59, %60, %cst_24 {dimension_numbers = #tpu.dot_dimension_numbers<[1], [0], [0], [1], [0, 0, 1, 1], [], []>} : vector<8x128xbf16>, vector<128x128xbf16>, vector<8x128xf32> -> vector<8x128xf32>
    %63 = vector.broadcast %61 : vector<1x128xf32> to vector<8x128xf32>
    %64 = arith.addf %62, %63 : vector<8x128xf32>
    %65 = vector.extract_strided_slice %64 {offsets = [0, 0], sizes = [8, 4], strides = [1, 1]} : vector<8x128xf32> to vector<8x4xf32>
    %c0_25 = arith.constant 0 : index
    %c0_26 = arith.constant 0 : index
    %66 = vector.load %arg10[%c0_25, %c0_26] : memref<8x4xf32, #tpu.memory_space<vmem>>, vector<8x4xf32>
    tpu.vector_store %arg10[%c0_25, %c0_26], %65 {strides = array<i32>} : memref<8x4xf32, #tpu.memory_space<vmem>>, vector<8x4xf32>,
    return
  }
  func.func @transform_0(%arg0: i32) -> (i32, i32) {
    %c0_i32 = arith.constant 0 : i32
    %c0_i32_0 = arith.constant 0 : i32
    return %arg0, %c0_i32 : i32, i32
  }
  func.func @transform_1(%arg0: i32) -> (i32, i32) {
    %c0_i32 = arith.constant 0 : i32
    %c0_i32_0 = arith.constant 0 : i32
    %c0_i32_1 = arith.constant 0 : i32
    return %c0_i32, %c0_i32_0 : i32, i32
  }
  func.func @transform_2(%arg0: i32) -> (i32, i32) {
    %c0_i32 = arith.constant 0 : i32
    %c0_i32_0 = arith.constant 0 : i32
    %c0_i32_1 = arith.constant 0 : i32
    return %c0_i32, %c0_i32_0 : i32, i32
  }
  func.func @transform_3(%arg0: i32) -> (i32, i32) {
    %c0_i32 = arith.constant 0 : i32
    %c0_i32_0 = arith.constant 0 : i32
    %c0_i32_1 = arith.constant 0 : i32
    return %c0_i32, %c0_i32_0 : i32, i32
  }
  func.func @transform_4(%arg0: i32) -> (i32, i32) {
    %c0_i32 = arith.constant 0 : i32
    %c0_i32_0 = arith.constant 0 : i32
    %c0_i32_1 = arith.constant 0 : i32
    return %c0_i32, %c0_i32_0 : i32, i32
  }
  func.func @transform_5(%arg0: i32) -> (i32, i32) {
    %c0_i32 = arith.constant 0 : i32
    %c0_i32_0 = arith.constant 0 : i32
    %c0_i32_1 = arith.constant 0 : i32
    return %c0_i32, %c0_i32_0 : i32, i32
  }
  func.func @transform_6(%arg0: i32) -> (i32, i32) {
    %c0_i32 = arith.constant 0 : i32
    %c0_i32_0 = arith.constant 0 : i32
    %c0_i32_1 = arith.constant 0 : i32
    return %c0_i32, %c0_i32_0 : i32, i32
  }
  func.func @transform_7(%arg0: i32) -> (i32, i32) {
    %c0_i32 = arith.constant 0 : i32
    %c0_i32_0 = arith.constant 0 : i32
    %c0_i32_1 = arith.constant 0 : i32
    return %c0_i32, %c0_i32_0 : i32, i32
  }
  func.func @transform_8(%arg0: i32) -> (i32, i32) {
    %c0_i32 = arith.constant 0 : i32
    %c0_i32_0 = arith.constant 0 : i32
    %c0_i32_1 = arith.constant 0 : i32
    return %c0_i32, %c0_i32_0 : i32, i32
  }
  func.func @transform_9(%arg0: i32) -> (i32, i32) {
    %c0_i32 = arith.constant 0 : i32
    %c0_i32_0 = arith.constant 0 : i32
    return %arg0, %c0_i32 : i32, i32
  }
}

</mosaic_0001>

<bundles_post_ra>
// kernel: tpu_custom_call.1
= control target key start
LH: loop header
LB: loop body
LE: loop exit
PB: predicated region body
PF: predicated region fallthrough
CT: control target
= control target key end

     0   :  { %14 = vsyncpa [#allocation3], 0  ;;  %s695_s0 = inlined_call_operand.vmem [shape: f32[8,4], index: 0, kind: input, shape index: {}]   ;;  %s696_s1 = inlined_call_operand.vmem [shape: f32[4,128], index: 1, kind: input, shape index: {}]   ;;  %s697_s2 = inlined_call_operand.vmem [shape: f32[1,128], index: 2, kind: input, shape index: {}]   ;;  %s698_s3 = inlined_call_operand.hbm [shape: bf16[128,128], index: 3, kind: input, shape index: {}]   ;;  %s699_s4 = inlined_call_operand.vmem [shape: f32[1,128], index: 4, kind: input, shape index: {}]   ;;  %s700_s5 = inlined_call_operand.hbm [shape: bf16[128,128], index: 5, kind: input, shape index: {}]   ;;  %s701_s6 = inlined_call_operand.vmem [shape: f32[1,128], index: 6, kind: input, shape index: {}]   ;;  %s702_s7 = inlined_call_operand.hbm [shape: bf16[128,128], index: 7, kind: input, shape index: {}]   ;;  %s703_s8 = inlined_call_operand.vmem [shape: f32[1,128], index: 8, kind: input, shape index: {}]   ;;  %s704_s9 = inlined_call_operand.vmem [shape: f32[8,4], index: 9, kind: output, shape index: {}]  }
   0x1   :  { %15 = vsyncpa [#allocation5], 0  ;;  %s41_s11 = sshll.u32 %s700_s5, 4  ;;  %s606_s12 = smov [#allocation4]   ;;  %s42_s11 = int_to_ptr.hbm [resolvable:$true] %s41_s11 }
   0x2   :  { %s43_s13 = sshll.u32 %s606_s12, 4  ;;  %s26_s16 = sshll.u32 %s698_s3, 4  ;;  %s44_s13 = int_to_ptr.vmem [resolvable:$true] %s43_s13  ;;  %s27_s16 = int_to_ptr.hbm [resolvable:$true] %s26_s16 }
   0x3   :  { %s607_s17 = smov 64   ;;  %s608_s18 = smov 4  }
   0x4   :  { %49 = dma.hbm_to_vmem [thread:$0]  %s42_s11, 1024, %s44_s13, [#allocation5], %s607_s17, %s607_s17, %s608_s18  }
   0x5   :  { %s609_s19 = smov [#allocation2]   ;;  %s56_s23 = sshll.u32 %s702_s7, 4  ;;  %s57_s23 = int_to_ptr.hbm [resolvable:$true] %s56_s23 }
   0x6   :  { %s28_s20 = sshll.u32 %s609_s19, 4  ;;  %s610_s5 = smov [#allocation6]   ;;  %s29_s20 = int_to_ptr.vmem [resolvable:$true] %s28_s20 }
   0x7   :  { %34 = dma.hbm_to_vmem [thread:$0]  %s27_s16, 1024, %s29_s20, [#allocation3], %s607_s17, %s607_s17, %s608_s18  }
   0x8   :  { %s58_s24 = sshll.u32 %s610_s5, 4  ;;  %s59_s24 = int_to_ptr.vmem [resolvable:$true] %s58_s24 }
   0x9   :  { %64 = dma.hbm_to_vmem [thread:$0]  %s57_s23, 1024, %s59_s24, [#allocation5], %s607_s17, %s607_s17, %s608_s18  }
   0xa   :  { %602 = dma.done.wait [#allocation3], 1024  }
   0xb   :  { %603 = vsyncadd [#allocation3], 4294966272 }
   0xc   :  { %604 = dma.done.wait [#allocation5], 2048  }
   0xd   :  { %605 = vsyncadd [#allocation5], 4294965248  ;;  %v611_v0 = vmov 0   ;;  %v612_v1 = vmov 2   ;;  %v79_v2 = vld [vmem:[%s695_s0] sm:$0xff]  ;;  %v613_v3 = vmov 1  }
   0xe   :  { %515 = vset.pattern.permute.xlu0 %v611_v0  ;;  %517 = vset.pattern.permute.xlu1 %v612_v1  ;;  %v614_v4 = vmov 3   ;;  %v489_v5 = vld [vmem:[#allocation2 + $0x38] sm:$0xff]  ;;  %v488_v6 = vld [vmem:[#allocation2 + $0x30] sm:$0xff]  ;;  %v487_v7 = vld [vmem:[#allocation2 + $0x28] sm:$0xff]  ;;  %vm375_vm3 = vcmask 31744  }
   0xf   :  { %87 = vperm.xlu0 %515, %v79_v2   ;;  %101 = vperm.xlu1 %517, %v79_v2   ;;  %v486_v8 = vld [vmem:[#allocation2 + $0x20] sm:$0xff]  ;;  %v485_v9 = vld [vmem:[#allocation2 + $0x18] sm:$0xff]  ;;  %v484_v10 = vld [vmem:[#allocation2 + $0x10] sm:$0xff] }
  0x10   :  { %188 = vmatpush.bf16.msra.mxu0 %v489_v5  ;;  %v483_v11 = vld [vmem:[#allocation2 + $0x8] sm:$0xff]  ;;  %v482_v12 = vld [vmem:[#allocation2] sm:$0xff]  ;;  %v497_v16 = vld [vmem:[#allocation4 + $0x38] sm:$0xff] }
  0x11   :  { %v80_v13 = vld [vmem:[%s696_s1] sm:$0xf]  ;;  %275 = vmatpush.bf16.msra.mxu1 %v497_v16  ;;  %v496_v18 = vld [vmem:[#allocation4 + $0x30] sm:$0xff]  ;;  %v495_v22 = vld [vmem:[#allocation4 + $0x28] sm:$0xff] }
  0x12   :  { %v90_v17 = vperm.slane %v80_v13, 0  ;;  %v520_v19 = vld [vmem:[%s697_s2] ss:$0 sm:$0xff]  ;;  %v97_v21 = vperm.slane %v80_v13, 1  ;;  %v104_v23 = vperm.slane %v80_v13, 2  ;;  %v111_v24 = vperm.slane %v80_v13, 3 }
  0x13   :  { %v494_v29 = vld [vmem:[#allocation4 + $0x20] sm:$0xff]  ;;  %v493_v40 = vld [vmem:[#allocation4 + $0x18] sm:$0xff]  ;;  %v492_v41 = vld [vmem:[#allocation4 + $0x10] sm:$0xff] }
  0x14   :  { %189 = vmatpush.bf16.msra.mxu0 %v488_v6  ;;  %v491_v42 = vld [vmem:[#allocation4 + $0x8] sm:$0xff]  ;;  %v490_v43 = vld [vmem:[#allocation4] sm:$0xff]  ;;  %v505_v44 = vld [vmem:[#allocation6 + $0x38] sm:$0xff] }
  0x15   :  { %276 = vmatpush.bf16.msra.mxu1 %v496_v18  ;;  %362 = vmatpush.bf16.msra.mxu2 %v505_v44  ;;  %v504_v45 = vld [vmem:[#allocation6 + $0x30] sm:$0xff]  ;;  %v503_v46 = vld [vmem:[#allocation6 + $0x28] sm:$0xff]  ;;  %v502_v47 = vld [vmem:[#allocation6 + $0x20] sm:$0xff] }
  0x16   :  { %v521_v48 = vld [vmem:[%s699_s4] ss:$0 sm:$0xff]  ;;  %v501_v57 = vld [vmem:[#allocation6 + $0x18] sm:$0xff]  ;;  %v500_v58 = vld [vmem:[#allocation6 + $0x10] sm:$0xff] }
  0x17   :  { %516 = vset.pattern.permute.xlu0 %v613_v3  ;;  %518 = vset.pattern.permute.xlu1 %v614_v4  ;;  %v499_v59 = vld [vmem:[#allocation6 + $0x8] sm:$0xff]  ;;  %v498_v60 = vld [vmem:[#allocation6] sm:$0xff] }
  0x18   :  { %94 = vperm.xlu0 %516, %v79_v2   ;;  %108 = vperm.xlu1 %518, %v79_v2   ;;  %v522_v61 = vld [vmem:[%s701_s6] ss:$0 sm:$0xff] }
  0x19   :  { %190 = vmatpush.bf16.msra.mxu0 %v487_v7  ;;  %277 = vmatpush.bf16.msra.mxu1 %v495_v22  ;;  %v523_v6 = vld [vmem:[%s703_s8] ss:$0 sm:$0xff] }
  0x1a   :  { %363 = vmatpush.bf16.msra.mxu2 %v504_v45 }
  0x1d   :  { %191 = vmatpush.bf16.msra.mxu0 %v486_v8  ;;  %278 = vmatpush.bf16.msra.mxu1 %v494_v29 }
  0x1e   :  { %364 = vmatpush.bf16.msra.mxu2 %v503_v46 }
  0x20   :  { %519 = vset.pattern.permute.xlu0 %v614_v4 }
  0x21   :  { %192 = vmatpush.bf16.msra.mxu0 %v485_v9  ;;  %279 = vmatpush.bf16.msra.mxu1 %v493_v40 }
  0x22   :  { %365 = vmatpush.bf16.msra.mxu2 %v502_v47 }
  0x25   :  { %193 = vmatpush.bf16.msra.mxu0 %v484_v10  ;;  %280 = vmatpush.bf16.msra.mxu1 %v492_v41 }
  0x26   :  { %366 = vmatpush.bf16.msra.mxu2 %v501_v57 }
  0x29   :  { %194 = vmatpush.bf16.msra.mxu0 %v483_v11  ;;  %281 = vmatpush.bf16.msra.mxu1 %v491_v42 }
  0x2a   :  { %367 = vmatpush.bf16.msra.mxu2 %v500_v58 }
  0x2d   :  { %195 = vmatpush.bf16.msra.mxu0 %v482_v12  ;;  %282 = vmatpush.bf16.msra.mxu1 %v490_v43 }
  0x2e   :  { %368 = vmatpush.bf16.msra.mxu2 %v499_v59 }
  0x32   :  { %369 = vmatpush.bf16.msra.mxu2 %v498_v60 }
  0x81   :  { %v88_v14 = vpop.permute.xlu0 %87  ;;  %v102_v15 = vpop.permute.xlu1 %101 }
  0x82   :  { %v91_v20 = vmul.f32 %v90_v17, %v88_v14  ;;  %v105_v30 = vmul.f32 %v104_v23, %v102_v15 }
  0x84   :  { %v92_v27 = vadd.f32 %v520_v19, %v91_v20 }
  0x8a   :  { %v95_v25 = vpop.permute.xlu0 %94  ;;  %v109_v26 = vpop.permute.xlu1 %108 }
  0x8b   :  { %v98_v28 = vmul.f32 %v97_v21, %v95_v25  ;;  %v112_v32 = vmul.f32 %v111_v24, %v109_v26 }
  0x8d   :  { %v99_v31 = vadd.f32 %v98_v28, %v92_v27 }
  0x8f   :  { %v106_v33 = vadd.f32 %v105_v30, %v99_v31 }
  0x91   :  { %v113_v34 = vadd.f32 %v112_v32, %v106_v33 }
  0x93   :  { %v115_v35 = vmul.f32 1.442695, %v113_v34  ;;  %vm114_vm0 = vcmp.gt.f32.partialorder %v113_v34, 0.0 }
  0x95   :  { %524 = vpow2.f32 %v115_v35 }
  0x9b   :  { %v525_v36 = vpop.eup %524 }
  0x9c   :  { %v383_v37 = vadd.f32 -1.0, %v525_v36 }
  0x9e   :  { %v118_v38 = vsel %vm114_vm0, %v113_v34, %v383_v37 }
  0x9f   :  { %v119_v39 = vpack.c.bf16 %v118_v38, %v118_v38 }
  0xa1   :  { %196 = vmatmul.bf16.vlgmr.msra.gmra.mxu0 %v119_v39 }
 0x11e   :  { %v197_v49 = vpop.f32.mrf.mxu0 }
 0x11f   :  { %v198_v50 = vadd.f32 %v521_v48, %v197_v49 }
 0x121   :  { %v202_v51 = vmul.f32 1.442695, %v198_v50  ;;  %vm201_vm1 = vcmp.gt.f32.partialorder %v198_v50, 0.0 }
 0x123   :  { %526 = vpow2.f32 %v202_v51 }
 0x126   :  { %v199_v52 = vpop.f32.mrf.mxu0 }
 0x129   :  { %v527_v53 = vpop.eup %526 }
 0x12a   :  { %v416_v54 = vadd.f32 -1.0, %v527_v53 }
 0x12c   :  { %v205_v55 = vsel %vm201_vm1, %v198_v50, %v416_v54 }
 0x12d   :  { %v206_v56 = vpack.c.bf16 %v205_v55, %v205_v55 }
 0x12f   :  { %283 = vmatmul.bf16.vlgmr.msra.gmra.mxu1 %v206_v56 }
 0x1ac   :  { %v284_v62 = vpop.f32.mrf.mxu1 }
 0x1ad   :  { %v285_v63 = vadd.f32 %v522_v61, %v284_v62 }
 0x1af   :  { %v289_v0 = vmul.f32 1.442695, %v285_v63  ;;  %vm288_vm2 = vcmp.gt.f32.partialorder %v285_v63, 0.0 }
 0x1b1   :  { %528 = vpow2.f32 %v289_v0 }
 0x1b4   :  { %v286_v1 = vpop.f32.mrf.mxu1 }
 0x1b7   :  { %v529_v2 = vpop.eup %528 }
 0x1b8   :  { %v449_v3 = vadd.f32 -1.0, %v529_v2 }
 0x1ba   :  { %v292_v4 = vsel %vm288_vm2, %v285_v63, %v449_v3 }
 0x1bb   :  { %v293_v5 = vpack.c.bf16 %v292_v4, %v292_v4 }
 0x1bd   :  { %370 = vmatmul.bf16.vlgmr.msra.gmra.mxu2 %v293_v5 }
 0x240   :  { %v371_v7 = vpop.f32.mrf.mxu2 }
 0x241   :  { %v372_v8 = vadd.f32 %v523_v6, %v371_v7 }
 0x243   :  { %376 = vst.msk [vmem:[%s704_s9] sm:$0xff] %vm375_vm3, %v372_v8 }
 0x248   :  { %v373_v9 = vpop.f32.mrf.mxu2 }
 0x249   :  { %381 = vsyncpa [#allocation3], 1 }
 0x24a   :  { %382 = vsyncpa [#allocation5], 1 }

</bundles_post_ra>
